<compile_context>
chip_gen: v5e
topology: v5e:2x2
jax: 0.10.0
libtpu: 0.0.40
codegen_flags: <defaults>
</compile_context>

<pallas_src>
import functools
import math

import jax
import jax.numpy as jnp
from jax.experimental import pallas as pl
from jax.experimental.pallas import tpu as pltpu


# ------------------------------------------------------------------ tiling plan

_VMEM_WS_BUDGET = 20 << 20      # target resident working set (safe on v7x 64 MiB/TC)
_DEFAULT_STEP_BYTES = 4 << 20   # target HBM traffic per grid step


def _fold_factor(d, itemsize):
    """Largest power-of-two sublane fold (<= full vreg sublane count) dividing d."""
    target = 8 * max(1, 4 // max(1, int(itemsize)))   # 8 for f32, 16 for bf16
    f = target
    while f > 1 and d % f != 0:
        f //= 2
    return f


def _plan(rows, d, hbm_per_lane, vmem_per_lane, target_step_bytes):
    """Pick (td, n_k, n_split, n_tiles, vmem_limit_bytes) for a lane reduction."""
    td_cap = max(128, (_VMEM_WS_BUDGET // vmem_per_lane) // 128 * 128)
    td_tgt = -(-max(1, int(target_step_bytes)) // hbm_per_lane)      # cdiv
    td_tgt = max(128, -(-td_tgt // 128) * 128)                       # round up to 128
    td = min(td_tgt, td_cap)
    if d <= td:
        td = d                                # single full-extent block (always legal)
        n_tiles, n_k, n_split = 1, 1, 1
    else:
        n_tiles = -(-d // td)
        n_split = 2                           # always shard across both v7x TCs
        n_k = -(-n_tiles // 2)
    ws = vmem_per_lane * td + (2 << 20)
    vmem_limit = int(min(max(2 * ws, 32 << 20), 48 << 20))
    vmem_limit = max(vmem_limit, ws + (2 << 20))
    return td, n_k, n_split, n_tiles, vmem_limit


def _make_in_map(n_k, n_tiles):
    """Lane-block index map; clamps the (possibly) over-covered trailing block."""
    last = n_tiles - 1
    if last <= 0:
        return lambda s, k: (0, 0)
    return lambda s, k: (0, jnp.minimum(s * n_k + k, last))


# ------------------------------------------------------------------ kernels

def _sse_kernel(*refs, n_pairs, n_k, td, d_valid, need_mask):
    # refs: a0, b0, a1, b1, ..., o_ref, acc_ref
    #   a/b  : (rows, td) lane tile of frame f (x_hat / target)
    #   o_ref: (1, rows, 1) partial sum of squared error for this split
    #   acc  : (rows, td) f32 lane-wide accumulator (VMEM scratch)
    o_ref = refs[2 * n_pairs]
    acc_ref = refs[2 * n_pairs + 1]
    k = pl.program_id(1)

    @pl.when(k == 0)
    def _():
        acc_ref[...] = jnp.zeros_like(acc_ref)

    sq_sum = None
    for f in range(n_pairs):
        a = refs[2 * f][...].astype(jnp.float32)
        b = refs[2 * f + 1][...].astype(jnp.float32)
        diff = a - b
        sq = diff * diff
        sq_sum = sq if sq_sum is None else sq_sum + sq
    if need_mask:
        s = pl.program_id(0)
        gidx = (s * n_k + k) * td + jax.lax.broadcasted_iota(
            jnp.int32, sq_sum.shape, 1)
        sq_sum = jnp.where(gidx < d_valid, sq_sum, 0.0)
    acc_ref[...] += sq_sum

    @pl.when(k == n_k - 1)
    def _():
        o_ref[...] = jnp.sum(acc_ref[...], axis=-1, keepdims=True)[None]


def _sumlog2_kernel(l_ref, o_ref, acc_ref, *, n_k, td, d_valid, need_mask):
    # l_ref : (rows, td) lane tile of the concatenated likelihood slab
    # o_ref : (1, rows, 1) partial sum(log2(likelihood)) for this split
    # acc   : (rows, td) f32 lane-wide accumulator (VMEM scratch)
    k = pl.program_id(1)

    @pl.when(k == 0)
    def _():
        acc_ref[...] = jnp.zeros_like(acc_ref)

    x = l_ref[...].astype(jnp.float32)
    if need_mask:
        s = pl.program_id(0)
        gidx = (s * n_k + k) * td + jax.lax.broadcasted_iota(jnp.int32, x.shape, 1)
        x = jnp.where(gidx < d_valid, x, 1.0)       # log2(1) == 0 for padded lanes
    acc_ref[...] += jnp.log2(x)                     # EUP-native transcendental

    @pl.when(k == n_k - 1)
    def _():
        o_ref[...] = jnp.sum(acc_ref[...], axis=-1, keepdims=True)[None]


# ------------------------------------------------------------------ pallas wrappers

def _sse_rows(pairs, *, target_step_bytes):
    """Per-row sum over all (a, b) pairs of sum((a - b)^2).  Each a/b: (rows, d).
    Returns (rows,) f32."""
    rows, d = pairs[0][0].shape
    n_pairs = len(pairs)
    flat_inputs = [t for p in pairs for t in p]
    itemsizes = [jnp.dtype(t.dtype).itemsize for t in flat_inputs]
    hbm_per_lane = rows * sum(itemsizes)
    vmem_per_lane = rows * (2 * sum(itemsizes) + 4)   # double-buffered inputs + f32 acc

    td, n_k, n_split, n_tiles, vmem_limit = _plan(
        rows, d, hbm_per_lane, vmem_per_lane, target_step_bytes)
    need_mask = (n_split * n_k * td) != d
    idx_map = _make_in_map(n_k, n_tiles)

    kernel = functools.partial(_sse_kernel, n_pairs=n_pairs, n_k=n_k, td=td,
                               d_valid=d, need_mask=need_mask)
    total_bytes = sum(t.size * jnp.dtype(t.dtype).itemsize for t in flat_inputs)
    cost = pl.CostEstimate(flops=4 * n_pairs * rows * d, transcendentals=0,
                           bytes_accessed=total_bytes + n_split * rows * 4)

    out = pl.pallas_call(
        kernel,
        out_shape=jax.ShapeDtypeStruct((n_split, rows, 1), jnp.float32),
        grid=(n_split, n_k),
        in_specs=[pl.BlockSpec((rows, td), idx_map) for _ in flat_inputs],
        out_specs=pl.BlockSpec((1, rows, 1), lambda s, k: (s, 0, 0)),
        scratch_shapes=[pltpu.VMEM((rows, td), jnp.float32)],
        compiler_params=pltpu.CompilerParams(
            dimension_semantics=("parallel", "arbitrary"),
            vmem_limit_bytes=vmem_limit),
        cost_estimate=cost,
    )(*flat_inputs)
    return jnp.sum(out, axis=(0, 2))


def _sum_log2_rows(l, *, target_step_bytes):
    """Per-row sum(log2(l)) over the lane axis.  l: (rows, d).  Returns (rows,) f32."""
    rows, d = l.shape
    itemsize = jnp.dtype(l.dtype).itemsize
    hbm_per_lane = rows * itemsize
    vmem_per_lane = rows * (2 * itemsize + 4)

    td, n_k, n_split, n_tiles, vmem_limit = _plan(
        rows, d, hbm_per_lane, vmem_per_lane, target_step_bytes)
    need_mask = (n_split * n_k * td) != d
    idx_map = _make_in_map(n_k, n_tiles)

    kernel = functools.partial(_sumlog2_kernel, n_k=n_k, td=td,
                               d_valid=d, need_mask=need_mask)
    cost = pl.CostEstimate(flops=rows * d, transcendentals=rows * d,
                           bytes_accessed=rows * d * itemsize + n_split * rows * 4)

    out = pl.pallas_call(
        kernel,
        out_shape=jax.ShapeDtypeStruct((n_split, rows, 1), jnp.float32),
        grid=(n_split, n_k),
        in_specs=[pl.BlockSpec((rows, td), idx_map)],
        out_specs=pl.BlockSpec((1, rows, 1), lambda s, k: (s, 0, 0)),
        scratch_shapes=[pltpu.VMEM((rows, td), jnp.float32)],
        compiler_params=pltpu.CompilerParams(
            dimension_semantics=("parallel", "arbitrary"),
            vmem_limit_bytes=vmem_limit),
        cost_estimate=cost,
    )(l)
    return jnp.sum(out, axis=(0, 2))


# ------------------------------------------------------------------ main wrapper

def rate_distortion_loss(output, target, lmbda=0.01, bitdepth=8,
                         target_step_bytes=_DEFAULT_STEP_BYTES):
    """JAX/Pallas equivalent of RateDistortionLoss.forward (return_details=False)."""
    num_frames = len(target)
    shapes = {tuple(x.shape) for x in target} | {tuple(x.shape) for x in output["x_hat"]}
    assert len(shapes) == 1, "all frames must share one (N, C, H, W) shape"
    N, C, H, W = target[0].shape
    D = C * H * W
    num_pixels = H * W * num_frames

    # ---- distortion: one fused call over all frame pairs -------------------
    # Downstream only needs per-batch *total* SSE: mse_loss, avg_scaled and
    # distortion are all linear in it (all frames have identical size).
    itemsize = max(jnp.dtype(x.dtype).itemsize
                   for x in (list(target) + list(output["x_hat"])))
    fold = _fold_factor(D, itemsize)
    rows, dd = N * fold, D // fold
    pairs = [(jnp.reshape(xh, (rows, dd)), jnp.reshape(x, (rows, dd)))   # free views
             for xh, x in zip(output["x_hat"], target)]
    sse_rows = _sse_rows(pairs, target_step_bytes=target_step_bytes)     # (rows,)
    sse = jnp.sum(jnp.reshape(sse_rows, (N, fold)), axis=1)              # (N,)

    # ---- bpp: all likelihood fields fused into one sum-log2 call ----------
    lk_flat = []
    for frame_lk in output["likelihoods"]:
        for _label, fields in frame_lk.items():
            for _field, v in fields.items():
                lk_flat.append(jnp.reshape(v, (N, -1)))
    if lk_flat:
        lk_cat = lk_flat[0] if len(lk_flat) == 1 else jnp.concatenate(lk_flat, axis=1)
        LD = lk_cat.shape[1]
        lfold = _fold_factor(LD, jnp.dtype(lk_cat.dtype).itemsize)
        lrows = N * lfold
        sl_rows = _sum_log2_rows(jnp.reshape(lk_cat, (lrows, LD // lfold)),
                                 target_step_bytes=target_step_bytes)    # (lrows,)
        sumlog2 = jnp.sum(jnp.reshape(sl_rows, (N, lfold)), axis=1)      # (N,)
        bpp_vec = sumlog2 * (-1.0 / float(num_pixels))                   # log2 -> no ln2
    else:
        bpp_vec = jnp.zeros((N,), jnp.float32)

    # ---- combine (cheap scalar glue) ---------------------------------------
    scale_d = float((2 ** bitdepth - 1) ** 2)
    per_mse = sse * (1.0 / float(num_frames * D))     # (N,)  mean over frames & CHW
    mse_loss = jnp.mean(per_mse)
    avg_scaled = scale_d * per_mse                    # (N,)
    bpp_loss = jnp.mean(bpp_vec)
    total_loss = jnp.mean(lmbda * avg_scaled) + bpp_loss
    distortion = jnp.mean(avg_scaled)

    return {
        "mse_loss": mse_loss,
        "loss": total_loss,
        "distortion": distortion,
        "bpp_loss": bpp_loss,
    }


# ------------------------------------------------------------------ reference

def rate_distortion_loss_ref(output, target, lmbda=0.01, bitdepth=8):
    """Pure-JAX reference mirroring the PyTorch code path."""
    num_frames = len(target)
    _, _, H, W = target[0].shape
    num_pixels = H * W * num_frames
    scale = (2 ** bitdepth - 1) ** 2

    distortions, scaled_list = [], []
    for x_hat, x in zip(output["x_hat"], target):
        v = (x_hat.astype(jnp.float32) - x.astype(jnp.float32)) ** 2
        dist = jnp.mean(v, axis=(1, 2, 3))
        distortions.append(dist)
        scaled_list.append(scale * dist)
    mse_loss = jnp.mean(jnp.stack(distortions))
    avg_scaled = sum(scaled_list) / num_frames

    bpp_loss_vec = 0.0
    for frame_lk in output["likelihoods"]:
        for _label, fields in frame_lk.items():
            for _field, v in fields.items():
                bpp_loss_vec += jnp.sum(jnp.log(v), axis=(1, 2, 3)) / (
                    -math.log(2) * num_pixels
                )
    bpp_loss = jnp.mean(bpp_loss_vec)
    total = jnp.mean(lmbda * avg_scaled) + bpp_loss
    return {
        "mse_loss": mse_loss,
        "loss": total,
        "distortion": jnp.mean(avg_scaled),
        "bpp_loss": bpp_loss,
    }


# ------------------------------------------------------------------ main

if __name__ == "__main__":
    key = jax.random.PRNGKey(0)
    # D = 3*28*28 = 2352 (folds 8-ways to 294 lanes); likelihood fields sum to
    # 3672 elems (folds to 459 lanes) -> small, but exercises ragged tails.
    num_frames, N, C, H, W = 3, 2, 3, 28, 28

    keys = jax.random.split(key, 4 * num_frames)
    target, x_hat, likelihoods = [], [], []
    for i in range(num_frames):
        target.append(jax.random.uniform(keys[4 * i + 0], (N, C, H, W), jnp.float32))
        x_hat.append(jax.random.uniform(keys[4 * i + 1], (N, C, H, W), jnp.float32))
        lk_y = jax.random.uniform(keys[4 * i + 2], (N, 16, 8, 8), jnp.float32,
                                  minval=0.05, maxval=1.0)          # 1024 elems
        lk_z = jax.random.uniform(keys[4 * i + 3], (N, 8, 5, 5), jnp.float32,
                                  minval=0.05, maxval=1.0)          # 200 elems (ragged)
        likelihoods.append({"keyframe": {"y": lk_y, "z": lk_z}})

    output = {"x_hat": x_hat, "likelihoods": likelihoods}
    ref = rate_distortion_loss_ref(output, target, lmbda=0.01, bitdepth=8)

    # 1) default byte budget: single full-extent blocks at these small shapes
    res = rate_distortion_loss(output, target, lmbda=0.01, bitdepth=8)
    jax.block_until_ready(res["loss"])
    for k in ("mse_loss", "loss", "distortion", "bpp_loss"):
        assert jnp.allclose(res[k], ref[k], rtol=1e-4, atol=1e-5), (k, res[k], ref[k])

    # 2) forced tiny byte budget: exercises 128-lane tiling, the two-core split
    #    (odd tile count -> clamped over-covered block), and the ragged masks.
    res_t = rate_distortion_loss(output, target, lmbda=0.01, bitdepth=8,
                                 target_step_bytes=1)
    jax.block_until_ready(res_t["loss"])
    for k in ("mse_loss", "loss", "distortion", "bpp_loss"):
        assert jnp.allclose(res_t[k], ref[k], rtol=1e-4, atol=1e-5), (k, res_t[k], ref[k])

    print("KERNEL_OK")
</pallas_src>

<mosaic_0001>
module attributes {stable_mosaic.version = 11 : i64} {
  func.func @_sse_kernel(%arg0: i32, %arg1: i32, %arg2: memref<16x294xf32, #tpu.memory_space<vmem>>, %arg3: memref<16x294xf32, #tpu.memory_space<vmem>>, %arg4: memref<16x294xf32, #tpu.memory_space<vmem>>, %arg5: memref<16x294xf32, #tpu.memory_space<vmem>>, %arg6: memref<16x294xf32, #tpu.memory_space<vmem>>, %arg7: memref<16x294xf32, #tpu.memory_space<vmem>>, %arg8: memref<1x16x1xf32, #tpu.memory_space<vmem>>, %arg9: memref<16x294xf32, #tpu.memory_space<vmem>>) attributes {dimension_semantics = [#tpu.dimension_semantics<parallel>, #tpu.dimension_semantics<arbitrary>], iteration_bounds = array<i64: 1, 1>, scalar_prefetch = 0 : i64, scratch_operands = 1 : i64, tpu.core_type = #tpu.core_type<tc>, window_params = [{pipeline_mode = #tpu.pipeline_mode<synchronous>, transform_indices = @transform_0, window_bounds = array<i64: 16, 294>}, {pipeline_mode = #tpu.pipeline_mode<synchronous>, transform_indices = @transform_1, window_bounds = array<i64: 16, 294>}, {pipeline_mode = #tpu.pipeline_mode<synchronous>, transform_indices = @transform_2, window_bounds = array<i64: 16, 294>}, {pipeline_mode = #tpu.pipeline_mode<synchronous>, transform_indices = @transform_3, window_bounds = array<i64: 16, 294>}, {pipeline_mode = #tpu.pipeline_mode<synchronous>, transform_indices = @transform_4, window_bounds = array<i64: 16, 294>}, {pipeline_mode = #tpu.pipeline_mode<synchronous>, transform_indices = @transform_5, window_bounds = array<i64: 16, 294>}, {transform_indices = @transform_6, window_bounds = array<i64: 1, 16, 1>}]} {
    %c0_i32 = arith.constant 0 : i32
    %0 = arith.cmpi eq, %arg1, %c0_i32 : i32
    %1 = arith.extui %0 : i1 to i32
    %c0_i32_0 = arith.constant 0 : i32
    %2 = arith.cmpi ne, %1, %c0_i32_0 : i32
    scf.if %2 {
      %cst = arith.constant 0.000000e+00 : f32
      %23 = vector.broadcast %cst : f32 to vector<16x294xf32>
      %c0_18 = arith.constant 0 : index
      %c0_19 = arith.constant 0 : index
      %24 = vector.load %arg9[%c0_18, %c0_19] : memref<16x294xf32, #tpu.memory_space<vmem>>, vector<16x294xf32>
      tpu.vector_store %arg9[%c0_18, %c0_19], %23 {strides = array<i32>} : memref<16x294xf32, #tpu.memory_space<vmem>>, vector<16x294xf32>,
    } else {
    }
    %c0 = arith.constant 0 : index
    %c0_1 = arith.constant 0 : index
    %3 = vector.load %arg2[%c0, %c0_1] : memref<16x294xf32, #tpu.memory_space<vmem>>, vector<16x294xf32>
    %c0_2 = arith.constant 0 : index
    %c0_3 = arith.constant 0 : index
    %4 = vector.load %arg3[%c0_2, %c0_3] : memref<16x294xf32, #tpu.memory_space<vmem>>, vector<16x294xf32>
    %5 = arith.subf %3, %4 : vector<16x294xf32>
    %6 = arith.mulf %5, %5 : vector<16x294xf32>
    %c0_4 = arith.constant 0 : index
    %c0_5 = arith.constant 0 : index
    %7 = vector.load %arg4[%c0_4, %c0_5] : memref<16x294xf32, #tpu.memory_space<vmem>>, vector<16x294xf32>
    %c0_6 = arith.constant 0 : index
    %c0_7 = arith.constant 0 : index
    %8 = vector.load %arg5[%c0_6, %c0_7] : memref<16x294xf32, #tpu.memory_space<vmem>>, vector<16x294xf32>
    %9 = arith.subf %7, %8 : vector<16x294xf32>
    %10 = arith.mulf %9, %9 : vector<16x294xf32>
    %11 = arith.addf %6, %10 : vector<16x294xf32>
    %c0_8 = arith.constant 0 : index
    %c0_9 = arith.constant 0 : index
    %12 = vector.load %arg6[%c0_8, %c0_9] : memref<16x294xf32, #tpu.memory_space<vmem>>, vector<16x294xf32>
    %c0_10 = arith.constant 0 : index
    %c0_11 = arith.constant 0 : index
    %13 = vector.load %arg7[%c0_10, %c0_11] : memref<16x294xf32, #tpu.memory_space<vmem>>, vector<16x294xf32>
    %14 = arith.subf %12, %13 : vector<16x294xf32>
    %15 = arith.mulf %14, %14 : vector<16x294xf32>
    %16 = arith.addf %11, %15 : vector<16x294xf32>
    %c0_12 = arith.constant 0 : index
    %c0_13 = arith.constant 0 : index
    %17 = vector.load %arg9[%c0_12, %c0_13] : memref<16x294xf32, #tpu.memory_space<vmem>>, vector<16x294xf32>
    %18 = arith.addf %17, %16 : vector<16x294xf32>
    %c0_14 = arith.constant 0 : index
    %c0_15 = arith.constant 0 : index
    %19 = vector.load %arg9[%c0_14, %c0_15] : memref<16x294xf32, #tpu.memory_space<vmem>>, vector<16x294xf32>
    tpu.vector_store %arg9[%c0_14, %c0_15], %18 {strides = array<i32>} : memref<16x294xf32, #tpu.memory_space<vmem>>, vector<16x294xf32>,
    %c0_i32_16 = arith.constant 0 : i32
    %20 = arith.cmpi eq, %arg1, %c0_i32_16 : i32
    %21 = arith.extui %20 : i1 to i32
    %c0_i32_17 = arith.constant 0 : i32
    %22 = arith.cmpi ne, %21, %c0_i32_17 : i32
    scf.if %22 {
      %c0_18 = arith.constant 0 : index
      %c0_19 = arith.constant 0 : index
      %23 = vector.load %arg9[%c0_18, %c0_19] : memref<16x294xf32, #tpu.memory_space<vmem>>, vector<16x294xf32>
      %cst = arith.constant dense<0.000000e+00> : vector<16xf32>
      %24 = vector.multi_reduction <add>, %23, %cst [1] : vector<16x294xf32> to vector<16xf32>
      %25 = vector.shape_cast %24 : vector<16xf32> to vector<16x1xf32>
      %26 = vector.shape_cast %25 : vector<16x1xf32> to vector<1x16x1xf32>
      %c0_20 = arith.constant 0 : index
      %c0_21 = arith.constant 0 : index
      %c0_22 = arith.constant 0 : index
      %27 = vector.load %arg8[%c0_20, %c0_21, %c0_22] : memref<1x16x1xf32, #tpu.memory_space<vmem>>, vector<1x16x1xf32>
      tpu.vector_store %arg8[%c0_20, %c0_21, %c0_22], %26 {strides = array<i32>} : memref<1x16x1xf32, #tpu.memory_space<vmem>>, vector<1x16x1xf32>,
    } else {
    }
    return
  }
  func.func @transform_0(%arg0: i32, %arg1: i32) -> (i32, i32) {
    %c0_i32 = arith.constant 0 : i32
    %c0_i32_0 = arith.constant 0 : i32
    %c0_i32_1 = arith.constant 0 : i32
    return %c0_i32, %c0_i32_0 : i32, i32
  }
  func.func @transform_1(%arg0: i32, %arg1: i32) -> (i32, i32) {
    %c0_i32 = arith.constant 0 : i32
    %c0_i32_0 = arith.constant 0 : i32
    %c0_i32_1 = arith.constant 0 : i32
    return %c0_i32, %c0_i32_0 : i32, i32
  }
  func.func @transform_2(%arg0: i32, %arg1: i32) -> (i32, i32) {
    %c0_i32 = arith.constant 0 : i32
    %c0_i32_0 = arith.constant 0 : i32
    %c0_i32_1 = arith.constant 0 : i32
    return %c0_i32, %c0_i32_0 : i32, i32
  }
  func.func @transform_3(%arg0: i32, %arg1: i32) -> (i32, i32) {
    %c0_i32 = arith.constant 0 : i32
    %c0_i32_0 = arith.constant 0 : i32
    %c0_i32_1 = arith.constant 0 : i32
    return %c0_i32, %c0_i32_0 : i32, i32
  }
  func.func @transform_4(%arg0: i32, %arg1: i32) -> (i32, i32) {
    %c0_i32 = arith.constant 0 : i32
    %c0_i32_0 = arith.constant 0 : i32
    %c0_i32_1 = arith.constant 0 : i32
    return %c0_i32, %c0_i32_0 : i32, i32
  }
  func.func @transform_5(%arg0: i32, %arg1: i32) -> (i32, i32) {
    %c0_i32 = arith.constant 0 : i32
    %c0_i32_0 = arith.constant 0 : i32
    %c0_i32_1 = arith.constant 0 : i32
    return %c0_i32, %c0_i32_0 : i32, i32
  }
  func.func @transform_6(%arg0: i32, %arg1: i32) -> (i32, i32, i32) {
    %c0_i32 = arith.constant 0 : i32
    %c0_i32_0 = arith.constant 0 : i32
    %c0_i32_1 = arith.constant 0 : i32
    return %arg0, %c0_i32, %c0_i32_0 : i32, i32, i32
  }
}

</mosaic_0001>

<bundles_post_ra>
// kernel: tpu_custom_call.1
= control target key start
LH: loop header
LB: loop body
LE: loop exit
PB: predicated region body
PF: predicated region fallthrough
CT: control target
= control target key end

     0   :  { %11 = vsyncpa [#allocation4], 0  ;;  %s514_s0 = inlined_call_operand.hbm [shape: f32[16,294], index: 0, kind: input, shape index: {}]   ;;  %s515_s1 = inlined_call_operand.hbm [shape: f32[16,294], index: 1, kind: input, shape index: {}]   ;;  %s516_s2 = inlined_call_operand.hbm [shape: f32[16,294], index: 2, kind: input, shape index: {}]   ;;  %s517_s3 = inlined_call_operand.hbm [shape: f32[16,294], index: 3, kind: input, shape index: {}]   ;;  %s518_s4 = inlined_call_operand.hbm [shape: f32[16,294], index: 4, kind: input, shape index: {}]   ;;  %s519_s5 = inlined_call_operand.hbm [shape: f32[16,294], index: 5, kind: input, shape index: {}]   ;;  %s520_s6 = inlined_call_operand.vmem [shape: f32[1,16,1], index: 6, kind: output, shape index: {}]  }
   0x1   :  { %12 = vsyncpa [#allocation6], 0 }
   0x2   :  { %13 = vsyncpa [#allocation9], 0 }
   0x3   :  { %14 = vsyncpa [#allocation12], 0  ;;  %s32_s23 = sshll.u32 %s515_s1, 4  ;;  %s422_s24 = smov [#allocation5]   ;;  %s33_s23 = int_to_ptr.hbm [resolvable:$true] %s32_s23 }
   0x4   :  { %s34_s25 = sshll.u32 %s422_s24, 4  ;;  %s58_s28 = sshll.u32 %s517_s3, 4  ;;  %s35_s25 = int_to_ptr.vmem [resolvable:$true] %s34_s25  ;;  %s59_s28 = int_to_ptr.hbm [resolvable:$true] %s58_s28 }
   0x5   :  { %s423_s29 = smov 384   ;;  %s424_s30 = smov 24  }
   0x6   :  { %40 = dma.hbm_to_vmem [thread:$0]  %s33_s23, 768, %s35_s25, [#allocation6], %s423_s29, %s423_s29, %s424_s30  }
   0x7   :  { %s425_s7 = smov [#allocation8]   ;;  %s19_s1 = sshll.u32 %s514_s0, 4  ;;  %s20_s1 = int_to_ptr.hbm [resolvable:$true] %s19_s1 }
   0x8   :  { %s60_s8 = sshll.u32 %s425_s7, 4  ;;  %s45_s12 = sshll.u32 %s516_s2, 4  ;;  %s61_s8 = int_to_ptr.vmem [resolvable:$true] %s60_s8  ;;  %s46_s12 = int_to_ptr.hbm [resolvable:$true] %s45_s12 }
   0x9   :  { %66 = dma.hbm_to_vmem [thread:$0]  %s59_s28, 768, %s61_s8, [#allocation9], %s423_s29, %s423_s29, %s424_s30  }
   0xa   :  { %s426_s13 = smov [#allocation3]   ;;  %s427_s15 = smov [#allocation7]  }
   0xb   :  { %s21_s14 = sshll.u32 %s426_s13, 4  ;;  %s47_s0 = sshll.u32 %s427_s15, 4  ;;  %s22_s14 = int_to_ptr.vmem [resolvable:$true] %s21_s14  ;;  %s48_s0 = int_to_ptr.vmem [resolvable:$true] %s47_s0 }
   0xc   :  { %27 = dma.hbm_to_vmem [thread:$0]  %s20_s1, 768, %s22_s14, [#allocation4], %s423_s29, %s423_s29, %s424_s30  }
   0xd   :  { %s71_s18 = sshll.u32 %s518_s4, 4  ;;  %s84_s20 = sshll.u32 %s519_s5, 4  ;;  %s72_s18 = int_to_ptr.hbm [resolvable:$true] %s71_s18  ;;  %s85_s20 = int_to_ptr.hbm [resolvable:$true] %s84_s20 }
   0xe   :  { %53 = dma.hbm_to_vmem [thread:$0]  %s46_s12, 768, %s48_s0, [#allocation6], %s423_s29, %s423_s29, %s424_s30  }
   0xf   :  { %s428_s21 = smov [#allocation10]   ;;  %s429_s23 = smov [#allocation11]  }
  0x10   :  { %s73_s22 = sshll.u32 %s428_s21, 4  ;;  %s86_s4 = sshll.u32 %s429_s23, 4  ;;  %s74_s22 = int_to_ptr.vmem [resolvable:$true] %s73_s22  ;;  %s87_s4 = int_to_ptr.vmem [resolvable:$true] %s86_s4 }
  0x11   :  { %79 = dma.hbm_to_vmem [thread:$0]  %s72_s18, 768, %s74_s22, [#allocation9], %s423_s29, %s423_s29, %s424_s30  }
  0x12   :  { %92 = dma.hbm_to_vmem [thread:$0]  %s85_s20, 768, %s87_s4, [#allocation12], %s423_s29, %s423_s29, %s424_s30  }
  0x13   :  { %414 = dma.done.wait [#allocation4], 768  }
  0x14   :  { %415 = vsyncadd [#allocation4], 4294966528 }
  0x15   :  { %416 = dma.done.wait [#allocation6], 1536  }
  0x16   :  { %417 = vsyncadd [#allocation6], 4294965760 }
  0x17   :  { %418 = dma.done.wait [#allocation9], 1536  }
  0x18   :  { %419 = vsyncadd [#allocation9], 4294965760 }
  0x19   :  { %420 = dma.done.wait [#allocation12], 768  }
  0x1a   :  { %421 = vsyncadd [#allocation12], 4294966528  ;;  %vm123_vm0 = vcmask 310272   ;;  %v430_v0 = vmov 0.0   ;;  %v128_v1 = vld [vmem:[#allocation3] sm:$0xff]  ;;  %v129_v2 = vld [vmem:[#allocation3 + $0x8] sm:$0xff] }
  0x1b   :  { %124 = vst.msk [vmem:[#allocation2 + $0x10] sm:$0xff] %vm123_vm0, %v430_v0  ;;  %v130_v3 = vld [vmem:[#allocation3 + $0x10] sm:$0xff]  ;;  %v133_v4 = vld [vmem:[#allocation3 + $0x28] sm:$0xff]  ;;  %v135_v6 = vld [vmem:[#allocation5 + $0x8] sm:$0xff]  ;;  %vm250_vm1 = vcmask 7168  }
  0x1c   :  { %127 = vst.msk [vmem:[#allocation2 + $0x28] sm:$0xff] %vm123_vm0, %v430_v0  ;;  %v134_v5 = vld [vmem:[#allocation5] sm:$0xff]  ;;  %v136_v7 = vld [vmem:[#allocation5 + $0x10] sm:$0xff]  ;;  %v139_v8 = vld [vmem:[#allocation5 + $0x28] sm:$0xff]  ;;  %v141_v10 = vsub.f32 %v129_v2, %v135_v6 }
  0x1d   :  { %v140_v9 = vsub.f32 %v128_v1, %v134_v5  ;;  %v152_v11 = vld [vmem:[#allocation7] sm:$0xff]  ;;  %v142_v12 = vsub.f32 %v130_v3, %v136_v7  ;;  %v145_v13 = vsub.f32 %v133_v4, %v139_v8  ;;  %v153_v14 = vld [vmem:[#allocation7 + $0x8] sm:$0xff]  ;;  %v154_v15 = vld [vmem:[#allocation7 + $0x10] sm:$0xff] }
  0x1e   :  { %v157_v16 = vld [vmem:[#allocation7 + $0x28] sm:$0xff]  ;;  %v158_v17 = vld [vmem:[#allocation8] sm:$0xff]  ;;  %v159_v18 = vld [vmem:[#allocation8 + $0x8] sm:$0xff]  ;;  %v147_v21 = vmul.f32 %v141_v10, %v141_v10 }
  0x1f   :  { %v160_v19 = vld [vmem:[#allocation8 + $0x10] sm:$0xff]  ;;  %v146_v20 = vmul.f32 %v140_v9, %v140_v9  ;;  %v163_v22 = vld [vmem:[#allocation8 + $0x28] sm:$0xff]  ;;  %v164_v23 = vsub.f32 %v152_v11, %v158_v17  ;;  %v165_v24 = vsub.f32 %v153_v14, %v159_v18  ;;  %v183_v26 = vld [vmem:[#allocation10 + $0x8] sm:$0xff]  ;;  %v148_v27 = vmul.f32 %v142_v12, %v142_v12 }
  0x20   :  { %v182_v25 = vld [vmem:[#allocation10] sm:$0xff]  ;;  %v151_v28 = vmul.f32 %v145_v13, %v145_v13  ;;  %v166_v29 = vsub.f32 %v154_v15, %v160_v19  ;;  %v169_v30 = vsub.f32 %v157_v16, %v163_v22  ;;  %v184_v31 = vld [vmem:[#allocation10 + $0x10] sm:$0xff]  ;;  %v187_v32 = vld [vmem:[#allocation10 + $0x28] sm:$0xff] }
  0x21   :  { %v188_v33 = vld [vmem:[#allocation11] sm:$0xff]  ;;  %v170_v34 = vmul.f32 %v164_v23, %v164_v23  ;;  %v171_v35 = vmul.f32 %v165_v24, %v165_v24  ;;  %v189_v36 = vld [vmem:[#allocation11 + $0x8] sm:$0xff]  ;;  %v190_v37 = vld [vmem:[#allocation11 + $0x10] sm:$0xff] }
  0x22   :  { %v193_v38 = vld [vmem:[#allocation11 + $0x28] sm:$0xff]  ;;  %v194_v39 = vsub.f32 %v182_v25, %v188_v33  ;;  %v172_v40 = vmul.f32 %v166_v29, %v166_v29  ;;  %v175_v41 = vmul.f32 %v169_v30, %v169_v30  ;;  %v195_v42 = vsub.f32 %v183_v26, %v189_v36  ;;  %v214_v49 = vld [vmem:[#allocation2 + $0x10] sm:$0xff]  ;;  %v137_v51 = vld [vmem:[#allocation5 + $0x18] sm:$0xff] }
  0x23   :  { %v196_v43 = vsub.f32 %v184_v31, %v190_v37  ;;  %v131_v44 = vld [vmem:[#allocation3 + $0x18] sm:$0xff]  ;;  %v176_v45 = vadd.f32 %v170_v34, %v146_v20  ;;  %v177_v46 = vadd.f32 %v171_v35, %v147_v21  ;;  %v199_v47 = vsub.f32 %v187_v32, %v193_v38  ;;  %v132_v50 = vld [vmem:[#allocation3 + $0x20] sm:$0xff]  ;;  %v138_v52 = vld [vmem:[#allocation5 + $0x20] sm:$0xff] }
  0x24   :  { %v200_v48 = vmul.f32 %v194_v39, %v194_v39  ;;  %v178_v53 = vadd.f32 %v172_v40, %v148_v27  ;;  %v181_v54 = vadd.f32 %v175_v41, %v151_v28  ;;  %v201_v55 = vmul.f32 %v195_v42, %v195_v42  ;;  %v155_v57 = vld [vmem:[#allocation7 + $0x18] sm:$0xff]  ;;  %v156_v58 = vld [vmem:[#allocation7 + $0x20] sm:$0xff]  ;;  %v161_v59 = vld [vmem:[#allocation8 + $0x18] sm:$0xff] }
  0x25   :  { %v202_v56 = vmul.f32 %v196_v43, %v196_v43  ;;  %v205_v60 = vmul.f32 %v199_v47, %v199_v47  ;;  %v217_v62 = vld [vmem:[#allocation2 + $0x28] sm:$0xff]  ;;  %v143_v63 = vsub.f32 %v131_v44, %v137_v51  ;;  %v144_v0 = vsub.f32 %v132_v50, %v138_v52  ;;  %v162_v1 = vld [vmem:[#allocation8 + $0x20] sm:$0xff]  ;;  %v186_v7 = vld [vmem:[#allocation10 + $0x20] sm:$0xff] }
  0x26   :  { %v206_v61 = vadd.f32 %v200_v48, %v176_v45  ;;  %v185_v2 = vld [vmem:[#allocation10 + $0x18] sm:$0xff]  ;;  %v207_v3 = vadd.f32 %v201_v55, %v177_v46  ;;  %v167_v5 = vsub.f32 %v155_v57, %v161_v59  ;;  %v168_v6 = vsub.f32 %v156_v58, %v162_v1  ;;  %v191_v8 = vld [vmem:[#allocation11 + $0x18] sm:$0xff]  ;;  %v192_v9 = vld [vmem:[#allocation11 + $0x20] sm:$0xff] }
  0x27   :  { %v208_v4 = vadd.f32 %v202_v56, %v178_v53  ;;  %v211_v10 = vadd.f32 %v205_v60, %v181_v54  ;;  %v149_v11 = vmul.f32 %v143_v63, %v143_v63  ;;  %v150_v12 = vmul.f32 %v144_v0, %v144_v0 }
  0x28   :  { %v173_v14 = vmul.f32 %v167_v5, %v167_v5  ;;  %v174_v15 = vmul.f32 %v168_v6, %v168_v6  ;;  %v197_v17 = vsub.f32 %v185_v2, %v191_v8  ;;  %v198_v18 = vsub.f32 %v186_v7, %v192_v9 }
  0x29   :  { %v220_v13 = vadd.f32 %v214_v49, %v208_v4  ;;  %v223_v16 = vadd.f32 %v217_v62, %v211_v10  ;;  %v240_v25 = vadd.f32 %v207_v3, %v206_v61 }
  0x2a   :  { %v179_v19 = vadd.f32 %v173_v14, %v149_v11  ;;  %v180_v20 = vadd.f32 %v174_v15, %v150_v12  ;;  %v203_v21 = vmul.f32 %v197_v17, %v197_v17  ;;  %v204_v22 = vmul.f32 %v198_v18, %v198_v18 }
  0x2b   :  { %227 = vst.msk [vmem:[#allocation2 + $0x10] sm:$0xff] %vm123_vm0, %v220_v13 }
  0x2c   :  { %230 = vst.msk [vmem:[#allocation2 + $0x28] sm:$0xff] %vm123_vm0, %v223_v16  ;;  %v209_v23 = vadd.f32 %v203_v21, %v179_v19  ;;  %v210_v24 = vadd.f32 %v204_v22, %v180_v20 }
  0x2e   :  { %v245_v30 = vadd.f32 %v210_v24, %v209_v23 }
  0x32   :  { %v236_v26 = vld [vmem:[#allocation2 + $0x10] sm:$0xff] }
  0x33   :  { %v241_v27 = vsel %vm123_vm0, %v236_v26, 0.0  ;;  %v239_v29 = vld [vmem:[#allocation2 + $0x28] sm:$0xff] }
  0x34   :  { %v242_v28 = vadd.f32 %v241_v27, %v240_v25  ;;  %v246_v31 = vsel %vm123_vm0, %v239_v29, 0.0 }
  0x35   :  { %v247_v32 = vadd.f32 %v246_v31, %v245_v30 }
  0x36   :  { %243 = vadd.xlane.f32.xlu0 %v242_v28 }
  0x3e   :  { %248 = vadd.xlane.f32.xlu0 %v247_v32 }
  0xa9   :  { %v244_v33 = vpop.xlane.xlu0 %243 }
  0xaa   :  { %251 = vst.msk [vmem:[%s520_s6] sm:$0xff] %vm250_vm1, %v244_v33 }
  0xb1   :  { %v249_v34 = vpop.xlane.xlu0 %248 }
  0xb2   :  { %252 = vst.msk [vmem:[%s520_s6 + $0x8] sm:$0xff] %vm250_vm1, %v249_v34 }
  0xb3   :  { %257 = vsyncpa [#allocation4], 1 }
  0xb4   :  { %258 = vsyncpa [#allocation6], 1 }
  0xb5   :  { %259 = vsyncpa [#allocation9], 1 }
  0xb6   :  { %260 = vsyncpa [#allocation12], 1 }

</bundles_post_ra>
